<compile_context>
chip_gen: v7x
topology: tpu7x:2x2x1
jax: 0.10.0
libtpu: 0.0.40
codegen_flags: <defaults>
</compile_context>

<pallas_src>
import functools

import jax
import jax.numpy as jnp
from jax.experimental import pallas as pl
from jax.experimental.pallas import tpu as pltpu


# ---------------------------------------------------------------------------
# VMEM budgeting (generation aware: v7x 64 MiB physical vs 128 MiB v5e/v6e).
# ---------------------------------------------------------------------------
def _vmem_capacity_bytes():
    try:
        cap = getattr(pltpu.get_tpu_info(), "vmem_capacity_bytes", None)
        if cap:
            return int(cap)
    except Exception:
        pass
    return 64 * 1024 * 1024  # conservative default (v7x per-core VMEM)


def _vmem_limit_bytes():
    cap = _vmem_capacity_bytes()
    return min((cap * 3) // 4, 100 * 1024 * 1024)


def _fused_footprint(C, N, in_bytes):
    # 2 inputs x 2 pipeline buffers + ~6 live f32 (C, N) intermediates.
    return 2 * 2 * C * N * in_bytes + 6 * C * N * 4


def _choose_tile(C, N, in_bytes, budget):
    """Largest lane-aligned spatial tile whose working set fits the budget."""
    if N <= 128:
        return N  # full extent (allowed when block dim equals array dim)
    max_tn = (N // 128) * 128
    for cand in (2048, 1024, 512, 256, 128):
        if cand > max_tn:
            continue
        tile_bytes = 2 * 2 * C * cand * in_bytes + 6 * C * cand * 4
        if tile_bytes <= budget:
            return cand
    return 128


# ---------------------------------------------------------------------------
# Kernel A (fused path): whole (C, N) slabs resident; target read exactly once.
# Output (B, 1, 1): per-batch mean of |1 - cos| over spatial positions.
# ---------------------------------------------------------------------------
def _fused_kernel(if_ref, tf_ref, o_ref, *, inv_n):
    imf = if_ref[0].astype(jnp.float32)                     # (C, N)
    tgt = tf_ref[0].astype(jnp.float32)                     # (C, N)
    tmean = jnp.sum(tgt, axis=1, keepdims=True) * inv_n     # (C, 1)
    ic = imf - tmean
    tc = tgt - tmean
    dot = jnp.sum(ic * tc, axis=0, keepdims=True)           # (1, N)
    ni = jnp.sum(ic * ic, axis=0, keepdims=True)
    nt = jnp.sum(tc * tc, axis=0, keepdims=True)
    cos = dot * jax.lax.rsqrt(ni) * jax.lax.rsqrt(nt)
    sim = jnp.abs(1.0 - cos)                                 # (1, N)
    o_ref[...] = (jnp.sum(sim, axis=1, keepdims=True) * inv_n).reshape(1, 1, 1)


# ---------------------------------------------------------------------------
# Kernel B (tiled fallback, prepass): per-batch target mean over positions.
# ---------------------------------------------------------------------------
def _target_mean_kernel(tf_ref, mean_ref, *, inv_n, n_true, tn, n_tiles,
                        need_mask):
    r = pl.program_id(1)

    @pl.when(r == 0)
    def _init():
        mean_ref[...] = jnp.zeros_like(mean_ref)

    tgt = tf_ref[...].astype(jnp.float32)                    # (1, C, TN)
    if need_mask:  # static: boundary block may contain undefined lanes
        lane = jax.lax.broadcasted_iota(jnp.int32, (1, 1, tn), 2)
        tgt = jnp.where(r * tn + lane < n_true, tgt, 0.0)
    mean_ref[...] += jnp.sum(tgt, axis=2, keepdims=True)

    @pl.when(r == n_tiles - 1)
    def _finalize():
        mean_ref[...] = mean_ref[...] * inv_n


# ---------------------------------------------------------------------------
# Kernel C (tiled fallback, loss): per-position cosine -> |1 - cos|,
# lane-wise accumulation in VMEM scratch, cross-lane reduce only at finalize.
# Grid = (batch, spatial-split, spatial-tile).
# ---------------------------------------------------------------------------
def _cos_diag_tiled_kernel(if_ref, tf_ref, tm_ref, o_ref, acc_ref, *,
                           inv_n, n_true, tn, tiles_per_split, need_mask):
    r = pl.program_id(2)

    @pl.when(r == 0)
    def _init():
        acc_ref[...] = jnp.zeros_like(acc_ref)

    imf = if_ref[0].astype(jnp.float32)                      # (C, TN)
    tgt = tf_ref[0].astype(jnp.float32)                      # (C, TN)
    tmean = tm_ref[0]                                        # (C, 1), f32

    ic = imf - tmean
    tc = tgt - tmean
    dot = jnp.sum(ic * tc, axis=0, keepdims=True)            # (1, TN)
    ni = jnp.sum(ic * ic, axis=0, keepdims=True)
    nt = jnp.sum(tc * tc, axis=0, keepdims=True)
    cos = dot * jax.lax.rsqrt(ni) * jax.lax.rsqrt(nt)
    sim = jnp.abs(1.0 - cos)                                  # (1, TN)

    if need_mask:  # static: mask out-of-range / duplicated boundary lanes
        s = pl.program_id(1)
        tile = s * tiles_per_split + r
        lane = jax.lax.broadcasted_iota(jnp.int32, (1, tn), 1)
        sim = jnp.where(tile * tn + lane < n_true, sim, 0.0)

    acc_ref[...] += sim  # pure VPU per tile; XLU reduce deferred to finalize

    @pl.when(r == tiles_per_split - 1)
    def _finalize():
        total = jnp.sum(acc_ref[...], axis=1, keepdims=True)  # (1, 1)
        o_ref[...] = (total * inv_n).reshape(1, 1, 1)


# ---------------------------------------------------------------------------
# Wrapper
# ---------------------------------------------------------------------------
@functools.partial(jax.jit, static_argnames=("similarity", "force_tiled"))
def cos_similar_loss(image_features, target_features, similarity="cos",
                     force_tiled=False):
    """Forward pass of CosSimilarLoss (cosine branch) with Pallas kernels."""
    # TODO(synk): the 'l2' branch of the original module is an unimplemented
    # `pass` (it would crash in PyTorch); only the cosine path is translated.
    del similarity

    B, C = image_features.shape[0], image_features.shape[1]
    # Native dtype straight into the kernels (f32 upcast happens per-tile).
    if_vec = image_features.reshape(B, C, -1)
    tf_vec = target_features.reshape(B, C, -1)
    N = if_vec.shape[-1]
    in_bytes = max(if_vec.dtype.itemsize, tf_vec.dtype.itemsize)

    vmem_limit = _vmem_limit_bytes()
    budget = max(vmem_limit - (4 << 20), 8 << 20)

    if (not force_tiled) and _fused_footprint(C, N, in_bytes) <= budget:
        # ---- Fused single-pass path -------------------------------------
        per_batch = pl.pallas_call(
            functools.partial(_fused_kernel, inv_n=1.0 / N),
            out_shape=jax.ShapeDtypeStruct((B, 1, 1), jnp.float32),
            grid=(B,),
            in_specs=[pl.BlockSpec((1, C, N), lambda b: (b, 0, 0)),
                      pl.BlockSpec((1, C, N), lambda b: (b, 0, 0))],
            out_specs=pl.BlockSpec((1, 1, 1), lambda b: (b, 0, 0)),
            compiler_params=pltpu.CompilerParams(
                dimension_semantics=("parallel",),
                vmem_limit_bytes=vmem_limit),
        )(if_vec, tf_vec)
        return jnp.mean(per_batch)

    # ---- Tiled fallback path (large N) -----------------------------------
    TN = _choose_tile(C, N, in_bytes, budget)
    n_tiles = -(-N // TN)
    # 2-way spatial split so both v7x TensorCores are fed when B == 1.
    n_split = 2 if (B == 1 and n_tiles >= 2) else 1
    tiles_per_split = -(-n_tiles // n_split)
    need_mask_mean = (n_tiles * TN) != N
    need_mask_loss = (n_split * tiles_per_split * TN) != N
    pad_grid = n_split * tiles_per_split > n_tiles

    tmean = pl.pallas_call(
        functools.partial(_target_mean_kernel, inv_n=1.0 / N, n_true=N, tn=TN,
                          n_tiles=n_tiles, need_mask=need_mask_mean),
        out_shape=jax.ShapeDtypeStruct((B, C, 1), jnp.float32),
        grid=(B, n_tiles),
        in_specs=[pl.BlockSpec((1, C, TN), lambda b, r: (b, 0, r))],
        out_specs=pl.BlockSpec((1, C, 1), lambda b, r: (b, 0, 0)),
        compiler_params=pltpu.CompilerParams(
            dimension_semantics=("parallel", "arbitrary"),
            vmem_limit_bytes=vmem_limit),
    )(tf_vec)

    if pad_grid:
        def _in_map(b, s, r):
            return (b, 0, jnp.minimum(s * tiles_per_split + r, n_tiles - 1))
    else:
        def _in_map(b, s, r):
            return (b, 0, s * tiles_per_split + r)

    partials = pl.pallas_call(
        functools.partial(_cos_diag_tiled_kernel, inv_n=1.0 / N, n_true=N,
                          tn=TN, tiles_per_split=tiles_per_split,
                          need_mask=need_mask_loss),
        out_shape=jax.ShapeDtypeStruct((B * n_split, 1, 1), jnp.float32),
        grid=(B, n_split, tiles_per_split),
        in_specs=[
            pl.BlockSpec((1, C, TN), _in_map),
            pl.BlockSpec((1, C, TN), _in_map),
            pl.BlockSpec((1, C, 1), lambda b, s, r: (b, 0, 0)),
        ],
        out_specs=pl.BlockSpec((1, 1, 1),
                               lambda b, s, r: (b * n_split + s, 0, 0)),
        scratch_shapes=[pltpu.VMEM((1, TN), jnp.float32)],
        compiler_params=pltpu.CompilerParams(
            dimension_semantics=("parallel", "parallel", "arbitrary"),
            vmem_limit_bytes=vmem_limit),
    )(if_vec, tf_vec, tmean)

    per_batch = jnp.sum(partials.reshape(B, n_split), axis=1)
    return jnp.mean(per_batch)


# ---------------------------------------------------------------------------
# Pure-JAX reference (mirrors the PyTorch module exactly, diag-only readout)
# ---------------------------------------------------------------------------
def _reference_loss(image_features, target_features):
    B, C = image_features.shape[0], image_features.shape[1]
    if_vec = jnp.transpose(image_features.reshape(B, C, -1), (0, 2, 1))
    tf_vec = jnp.transpose(target_features.reshape(B, C, -1), (0, 2, 1))
    tf_mean = jnp.mean(tf_vec, axis=1, keepdims=True)
    ic = if_vec - tf_mean
    tc = tf_vec - tf_mean
    icn = ic / jnp.sqrt(jnp.sum(ic * ic, axis=2, keepdims=True))
    tcn = tc / jnp.sqrt(jnp.sum(tc * tc, axis=2, keepdims=True))
    diag = jnp.sum(icn * tcn, axis=2)                 # diag of bmm(icn, tcn^T)
    sim_diag = jnp.abs(1.0 - diag)
    return jnp.mean(jnp.mean(sim_diag, axis=1))


if __name__ == "__main__":
    key = jax.random.PRNGKey(0)
    k1, k2, k3, k4 = jax.random.split(key, 4)

    # Case 1: fused single-pass path. batch=2, channels=64, 16x16 spatial.
    img1 = jax.random.normal(k1, (2, 64, 16, 16), jnp.float32)
    tgt1 = jax.random.normal(k2, (2, 64, 16, 16), jnp.float32)
    loss1 = jax.block_until_ready(cos_similar_loss(img1, tgt1))
    ref1 = _reference_loss(img1, tgt1)
    assert loss1.shape == () and bool(jnp.isfinite(loss1))
    assert bool(jnp.allclose(loss1, ref1, rtol=1e-4, atol=1e-5)), (loss1, ref1)

    # Case 2: tiled fallback (+ B=1 spatial core-split + partial boundary
    # tile, exercising the in-kernel lane masks). batch=1, channels=32, 14x14.
    img2 = jax.random.normal(k3, (1, 32, 14, 14), jnp.float32)
    tgt2 = jax.random.normal(k4, (1, 32, 14, 14), jnp.float32)
    loss2 = jax.block_until_ready(cos_similar_loss(img2, tgt2,
                                                   force_tiled=True))
    ref2 = _reference_loss(img2, tgt2)
    assert loss2.shape == () and bool(jnp.isfinite(loss2))
    assert bool(jnp.allclose(loss2, ref2, rtol=1e-4, atol=1e-5)), (loss2, ref2)

    # Case 3: native bf16 ingestion (no wrapper upcast; f32 math in-kernel).
    img3 = img1.astype(jnp.bfloat16)
    tgt3 = tgt1.astype(jnp.bfloat16)
    loss3 = jax.block_until_ready(cos_similar_loss(img3, tgt3))
    ref3 = _reference_loss(img3.astype(jnp.float32), tgt3.astype(jnp.float32))
    assert loss3.shape == () and bool(jnp.isfinite(loss3))
    assert bool(jnp.allclose(loss3, ref3, rtol=1e-3, atol=1e-4)), (loss3, ref3)

    print("KERNEL_OK")
</pallas_src>

<mosaic_0001>
module attributes {stable_mosaic.version = 11 : i64} {
  func.func @_fused_kernel(%arg0: i32, %arg1: memref<1x64x256xf32, #tpu.memory_space<vmem>>, %arg2: memref<1x64x256xf32, #tpu.memory_space<vmem>>, %arg3: memref<1x1x1xf32, #tpu.memory_space<vmem>>) attributes {dimension_semantics = [#tpu.dimension_semantics<parallel>], iteration_bounds = array<i64: 2>, scalar_prefetch = 0 : i64, scratch_operands = 0 : i64, tpu.core_type = #tpu.core_type<tc>, window_params = [{transform_indices = @transform_0, window_bounds = array<i64: 1, 64, 256>}, {transform_indices = @transform_1, window_bounds = array<i64: 1, 64, 256>}, {transform_indices = @transform_2, window_bounds = array<i64: 1, 1, 1>}]} {
    %c0 = arith.constant 0 : index
    %c0_0 = arith.constant 0 : index
    %c0_1 = arith.constant 0 : index
    %0 = vector.load %arg1[%c0, %c0_0, %c0_1] : memref<1x64x256xf32, #tpu.memory_space<vmem>>, vector<1x64x256xf32>
    %1 = vector.shape_cast %0 : vector<1x64x256xf32> to vector<64x256xf32>
    %c0_2 = arith.constant 0 : index
    %c0_3 = arith.constant 0 : index
    %c0_4 = arith.constant 0 : index
    %2 = vector.load %arg2[%c0_2, %c0_3, %c0_4] : memref<1x64x256xf32, #tpu.memory_space<vmem>>, vector<1x64x256xf32>
    %3 = vector.shape_cast %2 : vector<1x64x256xf32> to vector<64x256xf32>
    %cst = arith.constant dense<0.000000e+00> : vector<64xf32>
    %4 = vector.multi_reduction <add>, %3, %cst [1] : vector<64x256xf32> to vector<64xf32>
    %5 = vector.shape_cast %4 : vector<64xf32> to vector<64x1xf32>
    %cst_5 = arith.constant 3.906250e-03 : f32
    %6 = vector.broadcast %cst_5 : f32 to vector<64x1xf32>
    %7 = arith.mulf %5, %6 : vector<64x1xf32>
    %8 = vector.broadcast %7 : vector<64x1xf32> to vector<64x256xf32>
    %9 = arith.subf %1, %8 : vector<64x256xf32>
    %10 = vector.broadcast %7 : vector<64x1xf32> to vector<64x256xf32>
    %11 = arith.subf %3, %10 : vector<64x256xf32>
    %12 = arith.mulf %9, %11 : vector<64x256xf32>
    %cst_6 = arith.constant dense<0.000000e+00> : vector<256xf32>
    %13 = vector.multi_reduction <add>, %12, %cst_6 [0] : vector<64x256xf32> to vector<256xf32>
    %14 = vector.shape_cast %13 : vector<256xf32> to vector<1x256xf32>
    %15 = arith.mulf %9, %9 : vector<64x256xf32>
    %cst_7 = arith.constant dense<0.000000e+00> : vector<256xf32>
    %16 = vector.multi_reduction <add>, %15, %cst_7 [0] : vector<64x256xf32> to vector<256xf32>
    %17 = vector.shape_cast %16 : vector<256xf32> to vector<1x256xf32>
    %18 = arith.mulf %11, %11 : vector<64x256xf32>
    %cst_8 = arith.constant dense<0.000000e+00> : vector<256xf32>
    %19 = vector.multi_reduction <add>, %18, %cst_8 [0] : vector<64x256xf32> to vector<256xf32>
    %20 = vector.shape_cast %19 : vector<256xf32> to vector<1x256xf32>
    %21 = math.rsqrt %17 : vector<1x256xf32>
    %22 = arith.mulf %14, %21 : vector<1x256xf32>
    %23 = math.rsqrt %20 : vector<1x256xf32>
    %24 = arith.mulf %22, %23 : vector<1x256xf32>
    %cst_9 = arith.constant 1.000000e+00 : f32
    %25 = vector.broadcast %cst_9 : f32 to vector<1x256xf32>
    %26 = arith.subf %25, %24 : vector<1x256xf32>
    %27 = math.absf %26 : vector<1x256xf32>
    %cst_10 = arith.constant dense<0.000000e+00> : vector<1xf32>
    %28 = vector.multi_reduction <add>, %27, %cst_10 [1] : vector<1x256xf32> to vector<1xf32>
    %29 = vector.shape_cast %28 : vector<1xf32> to vector<1x1xf32>
    %cst_11 = arith.constant 3.906250e-03 : f32
    %30 = vector.broadcast %cst_11 : f32 to vector<1x1xf32>
    %31 = arith.mulf %29, %30 : vector<1x1xf32>
    %32 = vector.shape_cast %31 : vector<1x1xf32> to vector<1x1x1xf32>
    %c0_12 = arith.constant 0 : index
    %c0_13 = arith.constant 0 : index
    %c0_14 = arith.constant 0 : index
    %33 = vector.load %arg3[%c0_12, %c0_13, %c0_14] : memref<1x1x1xf32, #tpu.memory_space<vmem>>, vector<1x1x1xf32>
    tpu.vector_store %arg3[%c0_12, %c0_13, %c0_14], %32 {strides = array<i32>} : memref<1x1x1xf32, #tpu.memory_space<vmem>>, vector<1x1x1xf32>,
    return
  }
  func.func @transform_0(%arg0: i32) -> (i32, i32, i32) {
    %c0_i32 = arith.constant 0 : i32
    %c0_i32_0 = arith.constant 0 : i32
    %c0_i32_1 = arith.constant 0 : i32
    return %arg0, %c0_i32, %c0_i32_0 : i32, i32, i32
  }
  func.func @transform_1(%arg0: i32) -> (i32, i32, i32) {
    %c0_i32 = arith.constant 0 : i32
    %c0_i32_0 = arith.constant 0 : i32
    %c0_i32_1 = arith.constant 0 : i32
    return %arg0, %c0_i32, %c0_i32_0 : i32, i32, i32
  }
  func.func @transform_2(%arg0: i32) -> (i32, i32, i32) {
    %c0_i32 = arith.constant 0 : i32
    %c0_i32_0 = arith.constant 0 : i32
    %c0_i32_1 = arith.constant 0 : i32
    return %arg0, %c0_i32, %c0_i32_0 : i32, i32, i32
  }
}

</mosaic_0001>

<bundles_post_ra>
// kernel: cos_similar_loss.1
= control target key start
LH: loop header
LB: loop body
LE: loop exit
PB: predicated region body
PF: predicated region fallthrough
CT: control target
= control target key end

     0   :  { %s511_s9 = smov 0   ;;  %s605_s0 = inlined_call_operand.vmem [shape: f32[2,64,256], index: 0, kind: input, shape index: {}]   ;;  %s606_s1 = inlined_call_operand.vmem [shape: f32[2,64,256], index: 1, kind: input, shape index: {}]   ;;  %s607_s2 = inlined_call_operand.vmem [shape: f32[2,1,1], index: 2, kind: output, shape index: {}]  }
   0x1 LB: > { %s459_s10 = sadd.s32 4294967295, %s494_s9   ;;  %p463_p0 = scmp.ge.s32.totalorder %s494_s9, 1  ;;  %s494_s9 = sphi %s511_s9, %s12_s9  }
   0x2   : > { %p122_p1 = scmp.lt.s32.totalorder %s494_s9, 3 }
   0x4   : > { %p123_p2 = pnand %p463_p0, %p122_p1 }
   0x5   : > { %p147_p3 = scmp.lt.s32.totalorder (!%p123_p2), %s459_s10, 1  ;;  %vm398_vm0 = vcmask (!%p123_p2), 0  }
   0x6   : > { %126 = sbr.rel (%p123_p2) target bundleno = 376 (0x178), region = 28 }
   0xd   : > { %s609_s10 = smov (!%p147_p3, %s459_s10), 1 }
   0xe   : > { %s470_s11 = sshll.u32 %s609_s10, 7  ;;  %s159_s20 = scalar_lea.vmem %s607_s2, %s609_s10 }
   0xf   : > { %s156_s14 = scalar_lea.vmem %s606_s1, %s470_s11  ;;  %s568_s17 = scalar_lea.vmem %s605_s0, %s470_s11 }
  0x10   : > { %v176_v0 = vld [vmem:[%s156_s14] sm:$0xff]  ;;  %v177_v1 = vld [vmem:[%s156_s14 + $0x8] sm:$0xff]  ;;  %v527_v5 = vld [vmem:[%s156_s14 + $0x10] sm:$0xff] }
  0x11   : > { %v180_v2 = vld [vmem:[%s156_s14 + $0x20] sm:$0xff]  ;;  %v192_v3 = vadd.f32 %v177_v1, %v176_v0  ;;  %v181_v4 = vld [vmem:[%s156_s14 + $0x28] sm:$0xff]  ;;  %v529_v6 = vld [vmem:[%s156_s14 + $0x18] sm:$0xff] }
  0x12   : > { %v198_v7 = vadd.f32 %v181_v4, %v180_v2  ;;  %v531_v8 = vld [vmem:[%s156_s14 + $0x30] sm:$0xff]  ;;  %v533_v9 = vld [vmem:[%s156_s14 + $0x38] sm:$0xff]  ;;  %v195_v10 = vadd.f32 %v529_v6, %v527_v5  ;;  %v539_v12 = vld [vmem:[%s156_s14 + $0x40] sm:$0xff] }
  0x13   : > { %193 = vadd.xlane.f32.xlu0 %v192_v3  ;;  %v201_v11 = vadd.f32 %v533_v9, %v531_v8  ;;  %v541_v13 = vld [vmem:[%s156_s14 + $0x48] sm:$0xff]  ;;  %v543_v14 = vld [vmem:[%s156_s14 + $0x50] sm:$0xff]  ;;  %v545_v15 = vld [vmem:[%s156_s14 + $0x58] sm:$0xff] }
  0x14   : > { %199 = vadd.xlane.f32.xlu1 %v198_v7  ;;  %v204_v16 = vadd.f32 %v541_v13, %v539_v12  ;;  %v207_v17 = vadd.f32 %v545_v15, %v543_v14  ;;  %v551_v18 = vld [vmem:[%s156_s14 + $0x60] sm:$0xff]  ;;  %v553_v19 = vld [vmem:[%s156_s14 + $0x68] sm:$0xff]  ;;  %v555_v20 = vld [vmem:[%s156_s14 + $0x70] sm:$0xff] }
  0x15   : > { %v557_v21 = vld [vmem:[%s156_s14 + $0x78] sm:$0xff]  ;;  %v210_v22 = vadd.f32 %v553_v19, %v551_v18  ;;  %v160_v25 = vld [vmem:[%s568_s17] sm:$0xff]  ;;  %v161_v26 = vld [vmem:[%s568_s17 + $0x8] sm:$0xff] }
  0x16   : > { %v213_v23 = vadd.f32 %v557_v21, %v555_v20  ;;  %v164_v29 = vld [vmem:[%s568_s17 + $0x20] sm:$0xff]  ;;  %v165_v30 = vld [vmem:[%s568_s17 + $0x28] sm:$0xff]  ;;  %v162_v49 = vld [vmem:[%s568_s17 + $0x10] sm:$0xff] }
  0x17   : > { %196 = vadd.xlane.f32.xlu0 %v195_v10  ;;  %v163_v50 = vld [vmem:[%s568_s17 + $0x18] sm:$0xff]  ;;  %v166_v54 = vld [vmem:[%s568_s17 + $0x30] sm:$0xff] }
  0x18   : > { %202 = vadd.xlane.f32.xlu1 %v201_v11  ;;  %v167_v55 = vld [vmem:[%s568_s17 + $0x38] sm:$0xff] }
  0x1b   : > { %205 = vadd.xlane.f32.xlu0 %v204_v16 }
  0x1c   : > { %208 = vadd.xlane.f32.xlu1 %v207_v17 }
  0x1f   : > { %211 = vadd.xlane.f32.xlu0 %v210_v22 }
  0x20   : > { %214 = vadd.xlane.f32.xlu1 %v213_v23 }
  0xa0   : > { %v194_v24 = vpop.xlane.xlu0 %193 }
  0xa1   : > { %v216_v27 = vmul.f32 0.00390625, %v194_v24  ;;  %v200_v28 = vpop.xlane.xlu1 %199 }
  0xa2   : > { %v218_v31 = vmul.f32 0.00390625, %v200_v28 }
  0xa3   : > { %v224_v32 = vsub.f32 %v160_v25, %v216_v27  ;;  %v225_v33 = vsub.f32 %v161_v26, %v216_v27  ;;  %v240_v34 = vsub.f32 %v176_v0, %v216_v27  ;;  %v241_v35 = vsub.f32 %v177_v1, %v216_v27 }
  0xa4   : > { %v228_v36 = vsub.f32 %v164_v29, %v218_v31  ;;  %v229_v37 = vsub.f32 %v165_v30, %v218_v31  ;;  %v244_v38 = vsub.f32 %v180_v2, %v218_v31  ;;  %v245_v39 = vsub.f32 %v181_v4, %v218_v31  ;;  %v197_v40 = vpop.xlane.xlu0 %196 }
  0xa5   : > { %v203_v41 = vpop.xlane.xlu1 %202  ;;  %v256_v42 = vmul.f32 %v240_v34, %v224_v32  ;;  %v257_v43 = vmul.f32 %v241_v35, %v225_v33  ;;  %v298_v44 = vmul.f32 %v224_v32, %v224_v32  ;;  %v299_v45 = vmul.f32 %v225_v33, %v225_v33 }
  0xa6   : > { %v340_v46 = vmul.f32 %v240_v34, %v240_v34  ;;  %v341_v47 = vmul.f32 %v241_v35, %v241_v35  ;;  %v260_v48 = vmul.f32 %v244_v38, %v228_v36  ;;  %v261_v51 = vmul.f32 %v245_v39, %v229_v37  ;;  %v168_v35 = vld [vmem:[%s568_s17 + $0x40] sm:$0xff] }
  0xa7   : > { %v302_v52 = vmul.f32 %v228_v36, %v228_v36  ;;  %v217_v53 = vmul.f32 0.00390625, %v197_v40  ;;  %v219_v56 = vmul.f32 0.00390625, %v203_v41  ;;  %v303_v58 = vmul.f32 %v229_v37, %v229_v37  ;;  %v169_v36 = vld [vmem:[%s568_s17 + $0x48] sm:$0xff] }
  0xa8   : > { %v206_v57 = vpop.xlane.xlu0 %205  ;;  %v344_v59 = vmul.f32 %v244_v38, %v244_v38  ;;  %v345_v60 = vmul.f32 %v245_v39, %v245_v39 }
  0xa9   : > { %v220_v61 = vmul.f32 0.00390625, %v206_v57  ;;  %v226_v62 = vsub.f32 %v162_v49, %v217_v53  ;;  %v227_v63 = vsub.f32 %v163_v50, %v217_v53  ;;  %v242_v0 = vsub.f32 %v527_v5, %v217_v53  ;;  %v209_v22 = vpop.xlane.xlu1 %208 }
  0xaa   : > { %v243_v1 = vsub.f32 %v529_v6, %v217_v53  ;;  %v230_v2 = vsub.f32 %v166_v54, %v219_v56  ;;  %v231_v3 = vsub.f32 %v167_v55, %v219_v56  ;;  %v246_v4 = vsub.f32 %v531_v8, %v219_v56  ;;  %v170_v53 = vld [vmem:[%s568_s17 + $0x50] sm:$0xff]  ;;  %v171_v54 = vld [vmem:[%s568_s17 + $0x58] sm:$0xff] }
  0xab   : > { %v247_v7 = vsub.f32 %v533_v9, %v219_v56  ;;  %v258_v10 = vmul.f32 %v242_v0, %v226_v62  ;;  %v300_v16 = vmul.f32 %v226_v62, %v226_v62  ;;  %v301_v17 = vmul.f32 %v227_v63, %v227_v63 }
  0xac   : > { %v259_v11 = vmul.f32 %v243_v1, %v227_v63  ;;  %v342_v23 = vmul.f32 %v242_v0, %v242_v0  ;;  %v343_v24 = vmul.f32 %v243_v1, %v243_v1  ;;  %v262_v25 = vmul.f32 %v246_v4, %v230_v2 }
  0xad   : > { %v263_v26 = vmul.f32 %v247_v7, %v231_v3  ;;  %v272_v5 = vadd.f32 %v258_v10, %v256_v42  ;;  %v314_v6 = vadd.f32 %v300_v16, %v298_v44  ;;  %v327_v28 = vadd.f32 %v301_v17, %v299_v45  ;;  %v212_v44 = vpop.xlane.xlu0 %211  ;;  %v215_v45 = vpop.xlane.xlu1 %214 }
  0xae   : > { %v285_v27 = vadd.f32 %v259_v11, %v257_v43  ;;  %v356_v29 = vadd.f32 %v342_v23, %v340_v46  ;;  %v369_v30 = vadd.f32 %v343_v24, %v341_v47  ;;  %v304_v8 = vmul.f32 %v230_v2, %v230_v2 }
  0xaf   : > { %v305_v31 = vmul.f32 %v231_v3, %v231_v3  ;;  %v273_v9 = vadd.f32 %v272_v5, %v260_v48  ;;  %v315_v33 = vadd.f32 %v314_v6, %v302_v52  ;;  %v328_v34 = vadd.f32 %v327_v28, %v303_v58 }
  0xb0   : > { %v286_v32 = vadd.f32 %v285_v27, %v261_v51  ;;  %v346_v37 = vmul.f32 %v246_v4, %v246_v4  ;;  %v347_v38 = vmul.f32 %v247_v7, %v247_v7  ;;  %v357_v39 = vadd.f32 %v356_v29, %v344_v59  ;;  %v173_v7 = vld [vmem:[%s568_s17 + $0x68] sm:$0xff] }
  0xb1   : > { %v370_v40 = vadd.f32 %v369_v30, %v345_v60  ;;  %v274_v41 = vadd.f32 %v273_v9, %v262_v25  ;;  %v316_v43 = vadd.f32 %v315_v33, %v304_v8  ;;  %v329_v46 = vadd.f32 %v328_v34, %v305_v31  ;;  %v174_v34 = vld [vmem:[%s568_s17 + $0x70] sm:$0xff] }
  0xb2   : > { %v287_v42 = vadd.f32 %v286_v32, %v263_v26  ;;  %v358_v47 = vadd.f32 %v357_v39, %v346_v37  ;;  %v232_v49 = vsub.f32 %v168_v35, %v220_v61  ;;  %v233_v48 = vsub.f32 %v169_v36, %v220_v61  ;;  %v175_v35 = vld [vmem:[%s568_s17 + $0x78] sm:$0xff] }
  0xb3   : > { %v371_v50 = vadd.f32 %v370_v40, %v347_v38  ;;  %v248_v51 = vsub.f32 %v539_v12, %v220_v61  ;;  %v249_v52 = vsub.f32 %v541_v13, %v220_v61  ;;  %v221_v55 = vmul.f32 0.00390625, %v209_v22  ;;  %v172_v12 = vld [vmem:[%s568_s17 + $0x60] sm:$0xff] }
  0xb4   : > { %v306_v56 = vmul.f32 %v232_v49, %v232_v49  ;;  %v307_v57 = vmul.f32 %v233_v48, %v233_v48  ;;  %v222_v58 = vmul.f32 0.00390625, %v212_v44  ;;  %v223_v59 = vmul.f32 0.00390625, %v215_v45 }
  0xb5   : > { %v264_v60 = vmul.f32 %v248_v51, %v232_v49  ;;  %v265_v62 = vmul.f32 %v249_v52, %v233_v48  ;;  %v348_v63 = vmul.f32 %v248_v51, %v248_v51  ;;  %v349_v0 = vmul.f32 %v249_v52, %v249_v52 }
  0xb6   : > { %v317_v1 = vadd.f32 %v316_v43, %v306_v56  ;;  %v330_v2 = vadd.f32 %v329_v46, %v307_v57  ;;  %v234_v3 = vsub.f32 %v170_v53, %v221_v55  ;;  %v235_v4 = vsub.f32 %v171_v54, %v221_v55 }
  0xb7   : > { %v275_v13 = vadd.f32 %v274_v41, %v264_v60  ;;  %v288_v61 = vadd.f32 %v287_v42, %v265_v62  ;;  %v359_v10 = vadd.f32 %v358_v47, %v348_v63  ;;  %v372_v11 = vadd.f32 %v371_v50, %v349_v0 }
  0xb8   : > { %v250_v16 = vsub.f32 %v543_v14, %v221_v55  ;;  %v251_v17 = vsub.f32 %v545_v15, %v221_v55  ;;  %v308_v22 = vmul.f32 %v234_v3, %v234_v3  ;;  %v309_v23 = vmul.f32 %v235_v4, %v235_v4 }
  0xb9   : > { %v236_v24 = vsub.f32 %v172_v12, %v222_v58  ;;  %v237_v25 = vsub.f32 %v173_v7, %v222_v58  ;;  %v252_v26 = vsub.f32 %v551_v18, %v222_v58  ;;  %v253_v5 = vsub.f32 %v553_v19, %v222_v58 }
  0xba   : > { %v266_v27 = vmul.f32 %v250_v16, %v234_v3  ;;  %v267_v6 = vmul.f32 %v251_v17, %v235_v4  ;;  %v318_v28 = vadd.f32 %v317_v1, %v308_v22  ;;  %v331_v29 = vadd.f32 %v330_v2, %v309_v23 }
  0xbb   : > { %v350_v30 = vmul.f32 %v250_v16, %v250_v16  ;;  %v351_v8 = vmul.f32 %v251_v17, %v251_v17  ;;  %v268_v31 = vmul.f32 %v252_v26, %v236_v24  ;;  %v269_v14 = vmul.f32 %v253_v5, %v237_v25 }
  0xbc   : > { %v276_v9 = vadd.f32 %v275_v13, %v266_v27  ;;  %v289_v15 = vadd.f32 %v288_v61, %v267_v6  ;;  %v310_v32 = vmul.f32 %v236_v24, %v236_v24  ;;  %v311_v33 = vmul.f32 %v237_v25, %v237_v25 }
  0xbd   : > { %v360_v36 = vadd.f32 %v359_v10, %v350_v30  ;;  %v373_v37 = vadd.f32 %v372_v11, %v351_v8  ;;  %v352_v38 = vmul.f32 %v252_v26, %v252_v26  ;;  %v353_v18 = vmul.f32 %v253_v5, %v253_v5 }
  0xbe   : > { %v277_v39 = vadd.f32 %v276_v9, %v268_v31  ;;  %v290_v19 = vadd.f32 %v289_v15, %v269_v14  ;;  %v319_v40 = vadd.f32 %v318_v28, %v310_v32  ;;  %v332_v41 = vadd.f32 %v331_v29, %v311_v33 }
  0xbf   : > { %v238_v42 = vsub.f32 %v174_v34, %v223_v59  ;;  %v239_v43 = vsub.f32 %v175_v35, %v223_v59  ;;  %v361_v44 = vadd.f32 %v360_v36, %v352_v38  ;;  %v374_v45 = vadd.f32 %v373_v37, %v353_v18 }
  0xc0   : > { %v254_v46 = vsub.f32 %v555_v20, %v223_v59  ;;  %v255_v47 = vsub.f32 %v557_v21, %v223_v59 }
  0xc1   : > { %v312_v49 = vmul.f32 %v238_v42, %v238_v42  ;;  %v313_v48 = vmul.f32 %v239_v43, %v239_v43 }
  0xc2   : > { %v270_v50 = vmul.f32 %v254_v46, %v238_v42  ;;  %v271_v51 = vmul.f32 %v255_v47, %v239_v43  ;;  %v354_v52 = vmul.f32 %v254_v46, %v254_v46  ;;  %v355_v53 = vmul.f32 %v255_v47, %v255_v47 }
  0xc3   : > { %v320_v54 = vadd.f32 %v319_v40, %v312_v49  ;;  %v333_v55 = vadd.f32 %v332_v41, %v313_v48 }
  0xc4   : > { %v278_v56 = vadd.f32 %v277_v39, %v270_v50  ;;  %v291_v57 = vadd.f32 %v290_v19, %v271_v51  ;;  %v362_v58 = vadd.f32 %v361_v44, %v354_v52  ;;  %v375_v60 = vadd.f32 %v374_v45, %v355_v53 }
  0xc5   : > { %v321_v62 = vrot.slane %v320_v54, 4  ;;  %v334_v63 = vrot.slane %v333_v55, 4 }
  0xc6   : > { %v279_v0 = vrot.slane %v278_v56, 4  ;;  %v363_v1 = vrot.slane %v362_v58, 4  ;;  %v376_v2 = vrot.slane %v375_v60, 4  ;;  %v292_v20 = vrot.slane %v291_v57, 4 }
  0xc7   : > { %v322_v3 = vadd.f32 %v321_v62, %v320_v54  ;;  %v335_v21 = vadd.f32 %v334_v63, %v333_v55 }
  0xc8   : > { %v364_v59 = vadd.f32 %v363_v1, %v362_v58  ;;  %v377_v4 = vadd.f32 %v376_v2, %v375_v60  ;;  %v280_v10 = vadd.f32 %v279_v0, %v278_v56  ;;  %v293_v17 = vadd.f32 %v292_v20, %v291_v57 }
  0xc9   : > { %v323_v12 = vrot.slane %v322_v3, 2  ;;  %v336_v7 = vrot.slane %v335_v21, 2 }
  0xca   : > { %v365_v13 = vrot.slane %v364_v59, 2  ;;  %v378_v61 = vrot.slane %v377_v4, 2  ;;  %v281_v27 = vrot.slane %v280_v10, 2  ;;  %v294_v29 = vrot.slane %v293_v17, 2 }
  0xcb   : > { %v324_v11 = vadd.f32 %v323_v12, %v322_v3  ;;  %v337_v16 = vadd.f32 %v336_v7, %v335_v21 }
  0xcc   : > { %v366_v22 = vadd.f32 %v365_v13, %v364_v59  ;;  %v379_v23 = vadd.f32 %v378_v61, %v377_v4  ;;  %v282_v31 = vadd.f32 %v281_v27, %v280_v10  ;;  %v295_v14 = vadd.f32 %v294_v29, %v293_v17 }
  0xcd   : > { %v325_v24 = vrot.slane %v324_v11, 1  ;;  %v338_v25 = vrot.slane %v337_v16, 1 }
  0xce   : > { %v367_v26 = vrot.slane %v366_v22, 1  ;;  %v380_v5 = vrot.slane %v379_v23, 1  ;;  %v283_v9 = vrot.slane %v282_v31, 1  ;;  %v296_v15 = vrot.slane %v295_v14, 1 }
  0xcf   : > { %v326_v6 = vadd.f32 %v325_v24, %v324_v11  ;;  %v339_v28 = vadd.f32 %v338_v25, %v337_v16 }
  0xd0   : > { %v368_v30 = vadd.f32 %v367_v26, %v366_v22  ;;  %v381_v8 = vadd.f32 %v380_v5, %v379_v23  ;;  %v284_v32 = vadd.f32 %v283_v9, %v282_v31  ;;  %v297_v34 = vadd.f32 %v296_v15, %v295_v14 }
  0xd1   : > { %480 = vrsqrt.f32 %v326_v6 }
  0xd2   : > { %482 = vrsqrt.f32 %v339_v28 }
  0xd3   : > { %484 = vrsqrt.f32 %v368_v30 }
  0xd4   : > { %486 = vrsqrt.f32 %v381_v8 }
  0xdb   : > { %v481_v33 = vpop.eup %480 }
  0xdc   : > { %v483_v35 = vpop.eup %482  ;;  %v384_v36 = vmul.f32 %v481_v33, %v284_v32 }
  0xdd   : > { %v485_v37 = vpop.eup %484  ;;  %v385_v38 = vmul.f32 %v483_v35, %v297_v34 }
  0xde   : > { %v487_v18 = vpop.eup %486  ;;  %v388_v39 = vmul.f32 %v485_v37, %v384_v36 }
  0xdf   : > { %v389_v19 = vmul.f32 %v487_v18, %v385_v38 }
  0xe0   : > { %v390_v40 = vsub.f32 1.0, %v388_v39 }
  0xe1   : > { %v391_v41 = vsub.f32 1.0, %v389_v19 }
  0xe2   : > { %v392_v42 = vand.u32 2147483647, %v390_v40 }
  0xe3   : > { %v393_v43 = vand.u32 2147483647, %v391_v41 }
  0xe5   : > { %v394_v44 = vadd.f32 %v393_v43, %v392_v42 }
  0xe7   : > { %395 = vadd.xlane.f32.xlu0 %v394_v44 }
 0x174   : > { %v396_v45 = vpop.xlane.xlu0 %395 }
 0x175   : > { %v397_v46 = vmul.f32 0.00390625, %v396_v45 }
 0x177   : > { %399 = vst.msk [vmem:[%s159_s20] sm:$0x1] %vm398_vm0, %v397_v46 }
 0x178 PF: > { %s12_s9 = sadd.s32 1, %s494_s9  }
 0x179   : > { %p9_p4 = scmp.ge.s32.totalorder %s12_s9, 4  }
 0x17b   :  { %11 = sbr.rel (!%p9_p4) target bundleno = 1 (0x1), region = 61 }

</bundles_post_ra>
